<compile_context>
chip_gen: v7x
topology: tpu7x:2x2x1
jax: 0.10.0
libtpu: 0.0.40
codegen_flags: <defaults>
</compile_context>

<pallas_src>
import jax
import jax.numpy as jnp
from jax.experimental import pallas as pl
from jax.experimental.pallas import tpu as pltpu

EPS = 1e-6       # matches diceLoss(epsilon=1e-06); no other params in __init__
LANES = 128


def _round_up(x, m):
    return ((x + m - 1) // m) * m


def _device_plan():
    """(row_tile_cap, parallel_cores_per_chip) from the device generation."""
    kind = ""
    try:
        kind = jax.devices()[0].device_kind.lower()
    except Exception:
        pass
    if "v7" in kind:
        # 3.2 TB/s HBM: 1 MiB tiles are step-overhead dominated; ~4 MiB tiles
        # (T=4096) stay well inside the 32 MiB scoped VMEM default. 2 TCs/chip.
        return 4096, 2
    return 1024, 1


def _make_dice_kernel(R_rows, T, L, S, P, needs_mask):
    """R_rows: padded row count; T: row tile; S: tiles per part; P: parts."""

    def kernel(logits_ref, labels_ref, out_ref):
        s = pl.program_id(1)

        @pl.when(s == 0)
        def _init():
            out_ref[...] = jnp.zeros_like(out_ref)

        l0 = logits_ref[0, 0, :, :].astype(jnp.float32)          # (T, L)
        l1 = logits_ref[0, 1, :, :].astype(jnp.float32)          # (T, L)
        # softmax over the 2 channels == sigmoid(l1 - l0); tanh form (EUP).
        p1 = 0.5 * jnp.tanh(0.5 * (l1 - l0)) + 0.5
        # one-hot foreground target, built in-kernel from raw labels.
        tf = (labels_ref[0, 0, :, :] != 0).astype(jnp.float32)

        if needs_mask:
            part = (pl.program_id(0) % P) if P > 1 else 0
            t_global = part * S + s                               # logical tile
            rows = jax.lax.broadcasted_iota(jnp.int32, (T, L), 0) + t_global * T
            valid = rows < R_rows
            p1 = jnp.where(valid, p1, 0.0)
            tf = jnp.where(valid, tf, 0.0)

        def fold(x):                    # (T, L) -> (8, L): pure VPU adds
            return x.reshape(T // 8, 8, L).sum(axis=0)

        out_ref[0, 0] += fold(tf * p1)   # S_tp = sum(t1 * p1)
        out_ref[0, 1] += fold(p1)        # S_p  = sum(p1)
        out_ref[0, 2] += fold(p1 * p1)   # S_pp = sum(p1^2)
        out_ref[0, 3] += fold(tf)        # S_t  = sum(t1)

    return kernel


def dice_loss(logits, labels):
    """logits: (N, 2, H, W); labels: (N, 1, H, W) binary. Returns scalar f32."""
    N, C, H, W = logits.shape
    assert C == 2, "diceLoss builds 2-class one-hot targets"
    assert labels.size == N * H * W, "labels must be (N, 1, H, W)"
    HW = H * W

    cap, cores = _device_plan()
    R = _round_up(pl.cdiv(HW, LANES), 8)              # padded rows (mult of 8)
    P = 2 if (cores >= 2 and (N % 2 == 1) and R >= 16) else 1
    T = min(cap, _round_up(pl.cdiv(R, P), 8))         # row tile (mult of 8)
    S_total = pl.cdiv(R, T)                           # tiles over the image
    S = pl.cdiv(S_total, P)                           # tiles per part (grid ax 1)
    needs_mask = (P * S * T != R)
    G = N * P

    # Flatten spatial dims; pad (only if needed) with values whose contribution
    # to every sum is exactly zero: l1 - l0 = -60 -> tanh saturates -> p1 == 0.
    pad_px = R * LANES - HW
    flat_logits = logits.reshape(N, C, HW)
    flat_labels = labels.reshape(N, 1, HW)
    if pad_px:
        pad_l = jnp.broadcast_to(
            jnp.array([30.0, -30.0], dtype=logits.dtype).reshape(1, C, 1),
            (N, C, pad_px))
        flat_logits = jnp.concatenate([flat_logits, pad_l], axis=-1)
        flat_labels = jnp.concatenate(
            [flat_labels, jnp.zeros((N, 1, pad_px), dtype=labels.dtype)], axis=-1)
    logits_r = flat_logits.reshape(N, C, R, LANES)
    labels_r = flat_labels.reshape(N, 1, R, LANES)

    if P == 1:
        in_map = lambda g, s: (g, 0, s, 0)
    else:
        def in_map(g, s):
            row = jnp.minimum((g % P) * S + s, S_total - 1)   # clamp phys block
            return (g // P, 0, row, 0)

    sums = pl.pallas_call(
        _make_dice_kernel(R, T, LANES, S, P, needs_mask),
        out_shape=jax.ShapeDtypeStruct((G, 4, 8, LANES), jnp.float32),
        grid_spec=pltpu.PrefetchScalarGridSpec(
            num_scalar_prefetch=0,
            grid=(G, S),                                # reduction axis last
            in_specs=[
                pl.BlockSpec((1, C, T, LANES), in_map),
                pl.BlockSpec((1, 1, T, LANES), in_map),
            ],
            out_specs=pl.BlockSpec((1, 4, 8, LANES), lambda g, s: (g, 0, 0, 0)),
        ),
        compiler_params=pltpu.CompilerParams(
            dimension_semantics=("parallel", "arbitrary")),
    )(logits_r, labels_r)

    # Combine the per-part lane/sublane partial sums and do the ratio math here
    # (O(N) scalars — negligible for XLA).
    sums = sums.reshape(N, P, 4, 8, LANES).sum(axis=(1, 3, 4))   # (N, 4)
    s_tp, s_p, s_pp, s_t = sums[:, 0], sums[:, 1], sums[:, 2], sums[:, 3]
    total = jnp.float32(HW)
    # one-hot identities: t^2 = t, p0 = 1 - p1
    num1 = 2.0 * s_tp
    den1 = s_pp + s_t
    num0 = 2.0 * (total - s_t - s_p + s_tp)
    den0 = 2.0 * total - 2.0 * s_p + s_pp - s_t
    ratios = num0 / (den0 + EPS) + num1 / (den1 + EPS)           # (N,)
    return 1.0 - jnp.sum(ratios) / (2.0 * N)


def dice_loss_ref(logits, labels):
    """Pure-JAX reference mirroring the PyTorch forward."""
    t = labels != 0
    targets = jnp.concatenate(
        [(~t).astype(jnp.float32), t.astype(jnp.float32)], axis=1)
    probs = jax.nn.softmax(logits.astype(jnp.float32), axis=1)
    axes = tuple(range(2, logits.ndim))
    num = 2.0 * jnp.sum(targets * probs, axis=axes)
    den = jnp.sum(probs ** 2 + targets ** 2, axis=axes)
    return 1.0 - jnp.mean(num / (den + EPS))


if __name__ == "__main__":
    key = jax.random.PRNGKey(0)
    k1, k2 = jax.random.split(key)
    N, C, H, W = 2, 2, 16, 16
    logits = jax.random.normal(k1, (N, C, H, W), dtype=jnp.float32)
    labels = jax.random.bernoulli(k2, 0.4, (N, 1, H, W)).astype(jnp.float32)

    loss = jax.block_until_ready(dice_loss(logits, labels))
    ref = dice_loss_ref(logits, labels)
    assert jnp.allclose(loss, ref, atol=1e-5, rtol=1e-5), (loss, ref)
    print("KERNEL_OK")
</pallas_src>

<mosaic_0001>
module attributes {stable_mosaic.version = 11 : i64} {
  func.func @kernel(%arg0: i32, %arg1: i32, %arg2: memref<1x2x8x128xf32, #tpu.memory_space<vmem>>, %arg3: memref<1x1x8x128xf32, #tpu.memory_space<vmem>>, %arg4: memref<1x4x8x128xf32, #tpu.memory_space<vmem>>) attributes {dimension_semantics = [#tpu.dimension_semantics<parallel>, #tpu.dimension_semantics<arbitrary>], iteration_bounds = array<i64: 2, 1>, scalar_prefetch = 0 : i64, scratch_operands = 0 : i64, tpu.core_type = #tpu.core_type<tc>, window_params = [{transform_indices = @transform_0, window_bounds = array<i64: 1, 2, 8, 128>}, {transform_indices = @transform_1, window_bounds = array<i64: 1, 1, 8, 128>}, {transform_indices = @transform_2, window_bounds = array<i64: 1, 4, 8, 128>}]} {
    %c0_i32 = arith.constant 0 : i32
    %0 = arith.cmpi eq, %arg1, %c0_i32 : i32
    %1 = arith.extui %0 : i1 to i32
    %c0_i32_0 = arith.constant 0 : i32
    %2 = arith.cmpi ne, %1, %c0_i32_0 : i32
    scf.if %2 {
      %cst_48 = arith.constant 0.000000e+00 : f32
      %55 = vector.broadcast %cst_48 : f32 to vector<1x4x8x128xf32>
      %c0_49 = arith.constant 0 : index
      %c0_50 = arith.constant 0 : index
      %c0_51 = arith.constant 0 : index
      %c0_52 = arith.constant 0 : index
      %56 = vector.load %arg4[%c0_49, %c0_50, %c0_51, %c0_52] : memref<1x4x8x128xf32, #tpu.memory_space<vmem>>, vector<1x4x8x128xf32>
      tpu.vector_store %arg4[%c0_49, %c0_50, %c0_51, %c0_52], %55 {strides = array<i32>} : memref<1x4x8x128xf32, #tpu.memory_space<vmem>>, vector<1x4x8x128xf32>,
    } else {
    }
    %c0 = arith.constant 0 : index
    %c0_1 = arith.constant 0 : index
    %c0_2 = arith.constant 0 : index
    %c0_3 = arith.constant 0 : index
    %3 = vector.load %arg2[%c0, %c0_1, %c0_2, %c0_3] : memref<1x2x8x128xf32, #tpu.memory_space<vmem>>, vector<1x1x8x128xf32>
    %4 = vector.shape_cast %3 : vector<1x1x8x128xf32> to vector<8x128xf32>
    %c0_4 = arith.constant 0 : index
    %c1 = arith.constant 1 : index
    %c0_5 = arith.constant 0 : index
    %c0_6 = arith.constant 0 : index
    %5 = vector.load %arg2[%c0_4, %c1, %c0_5, %c0_6] : memref<1x2x8x128xf32, #tpu.memory_space<vmem>>, vector<1x1x8x128xf32>
    %6 = vector.shape_cast %5 : vector<1x1x8x128xf32> to vector<8x128xf32>
    %7 = arith.subf %6, %4 : vector<8x128xf32>
    %cst = arith.constant 5.000000e-01 : f32
    %8 = vector.broadcast %cst : f32 to vector<8x128xf32>
    %9 = arith.mulf %8, %7 : vector<8x128xf32>
    %10 = math.tanh %9 : vector<8x128xf32>
    %cst_7 = arith.constant 5.000000e-01 : f32
    %11 = vector.broadcast %cst_7 : f32 to vector<8x128xf32>
    %12 = arith.mulf %11, %10 : vector<8x128xf32>
    %cst_8 = arith.constant 5.000000e-01 : f32
    %13 = vector.broadcast %cst_8 : f32 to vector<8x128xf32>
    %14 = arith.addf %12, %13 : vector<8x128xf32>
    %c0_9 = arith.constant 0 : index
    %c0_10 = arith.constant 0 : index
    %c0_11 = arith.constant 0 : index
    %c0_12 = arith.constant 0 : index
    %15 = vector.load %arg3[%c0_9, %c0_10, %c0_11, %c0_12] : memref<1x1x8x128xf32, #tpu.memory_space<vmem>>, vector<1x1x8x128xf32>
    %16 = vector.shape_cast %15 : vector<1x1x8x128xf32> to vector<8x128xf32>
    %cst_13 = arith.constant 0.000000e+00 : f32
    %17 = vector.broadcast %cst_13 : f32 to vector<8x128xf32>
    %18 = arith.cmpf one, %16, %17 : vector<8x128xf32>
    %19 = arith.extui %18 : vector<8x128xi1> to vector<8x128xi32>
    %20 = arith.sitofp %19 : vector<8x128xi32> to vector<8x128xf32>
    %c0_14 = arith.constant 0 : index
    %c0_15 = arith.constant 0 : index
    %c0_16 = arith.constant 0 : index
    %c0_17 = arith.constant 0 : index
    %21 = vector.load %arg4[%c0_14, %c0_15, %c0_16, %c0_17] : memref<1x4x8x128xf32, #tpu.memory_space<vmem>>, vector<1x1x8x128xf32>
    %22 = vector.shape_cast %21 : vector<1x1x8x128xf32> to vector<8x128xf32>
    %23 = arith.mulf %20, %14 : vector<8x128xf32>
    %24 = vector.shape_cast %23 : vector<8x128xf32> to vector<1x8x128xf32>
    %cst_18 = arith.constant dense<0.000000e+00> : vector<8x128xf32>
    %25 = vector.multi_reduction <add>, %24, %cst_18 [0] : vector<1x8x128xf32> to vector<8x128xf32>
    %26 = arith.addf %22, %25 : vector<8x128xf32>
    %c0_19 = arith.constant 0 : index
    %c0_20 = arith.constant 0 : index
    %c0_21 = arith.constant 0 : index
    %c0_22 = arith.constant 0 : index
    %27 = vector.load %arg4[%c0_19, %c0_20, %c0_21, %c0_22] : memref<1x4x8x128xf32, #tpu.memory_space<vmem>>, vector<1x1x8x128xf32>
    %28 = vector.shape_cast %27 : vector<1x1x8x128xf32> to vector<8x128xf32>
    %29 = vector.shape_cast %26 : vector<8x128xf32> to vector<1x1x8x128xf32>
    tpu.vector_store %arg4[%c0_19, %c0_20, %c0_21, %c0_22], %29 {strides = array<i32>} : memref<1x4x8x128xf32, #tpu.memory_space<vmem>>, vector<1x1x8x128xf32>,
    %c0_23 = arith.constant 0 : index
    %c1_24 = arith.constant 1 : index
    %c0_25 = arith.constant 0 : index
    %c0_26 = arith.constant 0 : index
    %30 = vector.load %arg4[%c0_23, %c1_24, %c0_25, %c0_26] : memref<1x4x8x128xf32, #tpu.memory_space<vmem>>, vector<1x1x8x128xf32>
    %31 = vector.shape_cast %30 : vector<1x1x8x128xf32> to vector<8x128xf32>
    %32 = vector.shape_cast %14 : vector<8x128xf32> to vector<1x8x128xf32>
    %cst_27 = arith.constant dense<0.000000e+00> : vector<8x128xf32>
    %33 = vector.multi_reduction <add>, %32, %cst_27 [0] : vector<1x8x128xf32> to vector<8x128xf32>
    %34 = arith.addf %31, %33 : vector<8x128xf32>
    %c0_28 = arith.constant 0 : index
    %c1_29 = arith.constant 1 : index
    %c0_30 = arith.constant 0 : index
    %c0_31 = arith.constant 0 : index
    %35 = vector.load %arg4[%c0_28, %c1_29, %c0_30, %c0_31] : memref<1x4x8x128xf32, #tpu.memory_space<vmem>>, vector<1x1x8x128xf32>
    %36 = vector.shape_cast %35 : vector<1x1x8x128xf32> to vector<8x128xf32>
    %37 = vector.shape_cast %34 : vector<8x128xf32> to vector<1x1x8x128xf32>
    tpu.vector_store %arg4[%c0_28, %c1_29, %c0_30, %c0_31], %37 {strides = array<i32>} : memref<1x4x8x128xf32, #tpu.memory_space<vmem>>, vector<1x1x8x128xf32>,
    %c0_32 = arith.constant 0 : index
    %c2 = arith.constant 2 : index
    %c0_33 = arith.constant 0 : index
    %c0_34 = arith.constant 0 : index
    %38 = vector.load %arg4[%c0_32, %c2, %c0_33, %c0_34] : memref<1x4x8x128xf32, #tpu.memory_space<vmem>>, vector<1x1x8x128xf32>
    %39 = vector.shape_cast %38 : vector<1x1x8x128xf32> to vector<8x128xf32>
    %40 = arith.mulf %14, %14 : vector<8x128xf32>
    %41 = vector.shape_cast %40 : vector<8x128xf32> to vector<1x8x128xf32>
    %cst_35 = arith.constant dense<0.000000e+00> : vector<8x128xf32>
    %42 = vector.multi_reduction <add>, %41, %cst_35 [0] : vector<1x8x128xf32> to vector<8x128xf32>
    %43 = arith.addf %39, %42 : vector<8x128xf32>
    %c0_36 = arith.constant 0 : index
    %c2_37 = arith.constant 2 : index
    %c0_38 = arith.constant 0 : index
    %c0_39 = arith.constant 0 : index
    %44 = vector.load %arg4[%c0_36, %c2_37, %c0_38, %c0_39] : memref<1x4x8x128xf32, #tpu.memory_space<vmem>>, vector<1x1x8x128xf32>
    %45 = vector.shape_cast %44 : vector<1x1x8x128xf32> to vector<8x128xf32>
    %46 = vector.shape_cast %43 : vector<8x128xf32> to vector<1x1x8x128xf32>
    tpu.vector_store %arg4[%c0_36, %c2_37, %c0_38, %c0_39], %46 {strides = array<i32>} : memref<1x4x8x128xf32, #tpu.memory_space<vmem>>, vector<1x1x8x128xf32>,
    %c0_40 = arith.constant 0 : index
    %c3 = arith.constant 3 : index
    %c0_41 = arith.constant 0 : index
    %c0_42 = arith.constant 0 : index
    %47 = vector.load %arg4[%c0_40, %c3, %c0_41, %c0_42] : memref<1x4x8x128xf32, #tpu.memory_space<vmem>>, vector<1x1x8x128xf32>
    %48 = vector.shape_cast %47 : vector<1x1x8x128xf32> to vector<8x128xf32>
    %49 = vector.shape_cast %20 : vector<8x128xf32> to vector<1x8x128xf32>
    %cst_43 = arith.constant dense<0.000000e+00> : vector<8x128xf32>
    %50 = vector.multi_reduction <add>, %49, %cst_43 [0] : vector<1x8x128xf32> to vector<8x128xf32>
    %51 = arith.addf %48, %50 : vector<8x128xf32>
    %c0_44 = arith.constant 0 : index
    %c3_45 = arith.constant 3 : index
    %c0_46 = arith.constant 0 : index
    %c0_47 = arith.constant 0 : index
    %52 = vector.load %arg4[%c0_44, %c3_45, %c0_46, %c0_47] : memref<1x4x8x128xf32, #tpu.memory_space<vmem>>, vector<1x1x8x128xf32>
    %53 = vector.shape_cast %52 : vector<1x1x8x128xf32> to vector<8x128xf32>
    %54 = vector.shape_cast %51 : vector<8x128xf32> to vector<1x1x8x128xf32>
    tpu.vector_store %arg4[%c0_44, %c3_45, %c0_46, %c0_47], %54 {strides = array<i32>} : memref<1x4x8x128xf32, #tpu.memory_space<vmem>>, vector<1x1x8x128xf32>,
    return
  }
  func.func @transform_0(%arg0: i32, %arg1: i32) -> (i32, i32, i32, i32) {
    %c0_i32 = arith.constant 0 : i32
    %c0_i32_0 = arith.constant 0 : i32
    %c0_i32_1 = arith.constant 0 : i32
    return %arg0, %c0_i32, %arg1, %c0_i32_0 : i32, i32, i32, i32
  }
  func.func @transform_1(%arg0: i32, %arg1: i32) -> (i32, i32, i32, i32) {
    %c0_i32 = arith.constant 0 : i32
    %c0_i32_0 = arith.constant 0 : i32
    %c0_i32_1 = arith.constant 0 : i32
    return %arg0, %c0_i32, %arg1, %c0_i32_0 : i32, i32, i32, i32
  }
  func.func @transform_2(%arg0: i32, %arg1: i32) -> (i32, i32, i32, i32) {
    %c0_i32 = arith.constant 0 : i32
    %c0_i32_0 = arith.constant 0 : i32
    %c0_i32_1 = arith.constant 0 : i32
    %c0_i32_2 = arith.constant 0 : i32
    return %arg0, %c0_i32, %c0_i32_0, %c0_i32_1 : i32, i32, i32, i32
  }
}

</mosaic_0001>

<bundles_post_ra>
// kernel: tpu_custom_call.1
= control target key start
LH: loop header
LB: loop body
LE: loop exit
PB: predicated region body
PF: predicated region fallthrough
CT: control target
= control target key end

     0   :  { %7 = vsyncpa [#allocation3], 0  ;;  %s870_s0 = inlined_call_operand.hbm [shape: f32[2,2,8,128], index: 0, kind: input, shape index: {}]   ;;  %s871_s1 = inlined_call_operand.hbm [shape: f32[2,1,8,128], index: 1, kind: input, shape index: {}]   ;;  %s872_s2 = inlined_call_operand.hbm [shape: f32[2,4,8,128], index: 2, kind: output, shape index: {}]  }
   0x1   :  { %9 = vsyncpa [#allocation3 + $0x1], 0 }
   0x2   :  { %10 = vsyncpa [#allocation6], 0 }
   0x3   :  { %12 = vsyncpa [#allocation6 + $0x1], 0 }
   0x4   :  { %13 = vsyncpa [#allocation4], 0 }
   0x5   :  { %15 = vsyncpa [#allocation4 + $0x1], 0  ;;  %s652_s9 = smov 0   ;;  %s654_s10 = smov 0  }
   0x6   :  { %s656_s11 = smov 0   ;;  %s658_s12 = smov 0  }
   0x7   :  { %s660_s13 = smov 0   ;;  %s662_s14 = smov 0  }
   0x8 LB: > { %s379_s15 = sadd.s32 4294967295, %s627_s14   ;;  %s380_s16 = sadd.s32 4294967294, %s627_s14   ;;  %s627_s14 = sphi %s662_s14, %s21_s14   ;;  %s623_s13 = sphi %s660_s13, %s891_s13   ;;  %s619_s12 = sphi %s658_s12, %s890_s12   ;;  %s615_s11 = sphi %s656_s11, %s889_s11   ;;  %s611_s10 = sphi %s654_s10, %s888_s10   ;;  %s607_s9 = sphi %s652_s9, %s887_s9  }
   0x9   : > { %s33_s17 = sadd.s32 1, %s623_s13  ;;  %s42_s18 = sadd.s32 1, %s615_s11 }
   0xa   : > { %p35_p0 = scmp.ge.s32.totalorder %s33_s17, 2  ;;  %p49_p1 = scmp.ne.s32.totalorder %s615_s11, %s611_s10 }
   0xb   : > { %p50_p2 = scmp.eq.s32.totalorder %s627_s14, 0  ;;  %p55_p3 = scmp.ne.s32.totalorder %s611_s10, %s607_s9 }
   0xc   : > { %s893_s17 = smov (%p35_p0, %s33_s17), 0  ;;  %p56_p5 = scmp.eq.s32.totalorder %s379_s15, 0 }
   0xd   : > { %p693_p4 = por %p50_p2, %p49_p1  ;;  %s37_s20 = ssub.s32 %s623_s13, %s893_s17 }
   0xe   : > { %p107_p6 = scmp.eq.s32.totalorder %s379_s15, 1  ;;  %p40_p7 = scmp.eq.s32.totalorder %s37_s20, 0 }
   0xf   : > { %p699_p8 = por %p56_p5, %p55_p3  ;;  %p113_p10 = scmp.eq.s32.totalorder %s380_s16, 1 }
  0x10   : > { %p703_p9 = por %p107_p6, %p49_p1  ;;  %p424_p13 = scmp.lt.s32.totalorder %s627_s14, 2 }
  0x11   : > { %s876_s21 = scalar_select %p699_p8, 1, 0 }
  0x12   : > { %s877_s22 = scalar_select %p703_p9, 1, 0 }
  0x13   : > { %s708_s23 = scalar_select %p40_p7, %s615_s11, %s42_s18  }
  0x14   : > { %p710_p11 = por %p113_p10, %p55_p3  ;;  %s717_s25 = sand.u32 1, %s615_s11  }
  0x15   : > { %s383_s26 = sshll.u32 %s717_s25, 4  ;;  %s405_s27 = sshll.u32 %s623_s13, 8 }
  0x16   : > { %s878_s24 = scalar_select %p710_p11, 1, 0 }
  0x17   : > { %s724_s30 = scalar_lea.hbm %s870_s0, %s405_s27  ;;  %s137_s3 = scalar_lea.vmem [#allocation2], %s383_s26 }
  0x18   : > { %s145_s4 = sshll.u32 %s137_s3, 4  ;;  %p730_p0 = pnand %p424_p13, %p693_p4  ;;  %s726_s4 = int_to_ptr.vmem [resolvable:$true] %s145_s4 }
  0x19   : > { %s134_s6 = scalar_lea.sflag [#allocation3], %s717_s25  ;;  %s481_s7 = scalar_lea.hbm %s724_s30, 256 }
  0x1a   : > { %p482_p2 = scmp.ne.s32.totalorder %s724_s30, %s481_s7  ;;  %p483_p3 = pneg %p730_p0 }
  0x1b   : > { %s486_s16 = scalar_lea.hbm %s870_s0, 512  ;;  %p487_p4 = scmp.lt.u32.totalorder %s724_s30, %s870_s0 }
  0x1c   : > { %p484_p5 = pnand %p483_p3, %p482_p2  ;;  %p488_p7 = scmp.lt.u32.totalorder %s486_s16, %s481_s7 }
  0x1d   : > { %p490_p13 = scmp.lt.u32.totalorder %s481_s7, %s724_s30 }
  0x1e   : > { %p485_p6 = pneg %p484_p5  ;;  %p489_p10 = por %p488_p7, %p487_p4 }
  0x20   : > { %p491_p12 = por %p490_p13, %p489_p10 }
  0x22   : > { %p492_p1 = pnand %p491_p12, %p485_p6 }
  0x24   : > { %495 = shalt.err (!%p492_p1)
}
  0x25   : > { %s496_s20 = scalar_lea.vmem %s726_s4, 256  ;;  %s629_s26 = smov [#allocation2]  }
  0x26   : > { %p497_p2 = scmp.ne.s32.totalorder %s726_s4, %s496_s20  ;;  %s501_s27 = sshll.u32 %s629_s26, 4  ;;  %s502_s27 = int_to_ptr.vmem [resolvable:$false] %s501_s27 }
  0x27   : > { %s503_s28 = scalar_lea.vmem %s502_s27, 512  ;;  %p504_p9 = scmp.lt.s32.totalorder %s726_s4, %s502_s27 }
  0x28   : > { %p499_p5 = pnand %p497_p2, %p483_p3  ;;  %p505_p4 = scmp.lt.s32.totalorder %s503_s28, %s496_s20 }
  0x2a   : > { %p500_p11 = pneg %p499_p5  ;;  %p506_p7 = por %p505_p4, %p504_p9 }
  0x2c   : > { %p507_p10 = pnand %p506_p7, %p500_p11 }
  0x2e   : > { %510 = shalt.err (!%p507_p10)
}
  0x2f   : > { %s630_s29 = smov 128   ;;  %s631_s3 = smov 8  }
  0x30   : > { %416 = dma.hbm_to_vmem [thread:$0]  (!%p730_p0), %s724_s30, 256, %s726_s4, %s134_s6, %s630_s29, %s630_s29, %s631_s3  }
  0x31   : > { %p172_p12 = scmp.lt.s32.totalorder %s627_s14, 3  ;;  %s386_s7 = sshll.u32 %s717_s25, 3 }
  0x32   : > { %s387_s8 = sshll.u32 %s623_s13, 7  ;;  %p880_p9 = scmp.ge.s32.totalorder %s627_s14, 1 }
  0x33   : > { %s775_s19 = scalar_lea.hbm %s871_s1, %s387_s8  ;;  %s159_s20 = scalar_lea.vmem [#allocation5], %s386_s7 }
  0x34   : > { %p768_p11 = pnand %p880_p9, %p172_p12  ;;  %s167_s26 = sshll.u32 %s159_s20, 4  ;;  %s168_s26 = int_to_ptr.vmem [resolvable:$true] %s167_s26 }
  0x35   : > { %s156_s30 = scalar_lea.sflag [#allocation6], %s717_s25  ;;  %s511_s4 = scalar_lea.hbm %s775_s19, 128 }
  0x36   : > { %s881_s15 = scalar_select %p768_p11, 1, 0 }
  0x37   : > { %p512_p1 = scmp.ne.s32.totalorder %s775_s19, %s511_s4  ;;  %s516_s28 = scalar_lea.hbm %s871_s1, 256 }
  0x38   : > { %p517_p2 = scmp.lt.u32.totalorder %s775_s19, %s871_s1  ;;  %p518_p5 = scmp.lt.u32.totalorder %s516_s28, %s511_s4 }
  0x39   : > { %p514_p6 = pnand %p512_p1, %p483_p3  ;;  %p520_p7 = scmp.lt.u32.totalorder %s511_s4, %s775_s19 }
  0x3a   : > { %p519_p4 = por %p518_p5, %p517_p2 }
  0x3b   : > { %p515_p13 = pneg %p514_p6 }
  0x3c   : > { %p521_p10 = por %p520_p7, %p519_p4 }
  0x3e   : > { %p522_p12 = pnand %p521_p10, %p515_p13 }
  0x40   : > { %525 = shalt.err (!%p522_p12)
}
  0x41   : > { %s526_s25 = scalar_lea.vmem %s168_s26, 128  ;;  %s632_s7 = smov [#allocation5]  }
  0x42   : > { %p527_p9 = scmp.ne.s32.totalorder %s168_s26, %s526_s25  ;;  %s531_s8 = sshll.u32 %s632_s7, 4  ;;  %s532_s8 = int_to_ptr.vmem [resolvable:$false] %s531_s8 }
  0x43   : > { %s533_s16 = scalar_lea.vmem %s532_s8, 256  ;;  %p534_p8 = scmp.lt.s32.totalorder %s168_s26, %s532_s8 }
  0x44   : > { %p529_p1 = pnand %p527_p9, %p483_p3  ;;  %p535_p11 = scmp.lt.s32.totalorder %s533_s16, %s526_s25 }
  0x46   : > { %p530_p6 = pneg %p529_p1  ;;  %p536_p2 = por %p535_p11, %p534_p8 }
  0x48   : > { %p537_p5 = pnand %p536_p2, %p530_p6 }
  0x4a   : > { %540 = shalt.err (!%p537_p5)
}
  0x4b   : > { %419 = dma.hbm_to_vmem [thread:$0]  (!%p730_p0), %s775_s19, 128, %s168_s26, %s156_s30  }
  0x4c   : > { %p882_p13 = scmp.ne.s32.totalorder %s881_s15, 0 }
  0x4d   : > { %s800_s18 = sand.u32 (!%p882_p13), 1, %s611_s10   ;;  %p883_p3 = scmp.ne.s32.totalorder (!%p882_p13), %s876_s21, 0 }
  0x4e   : > { %176 = sbr.rel (%p882_p13) target bundleno = 126 (0x7e), region = 28  ;;  %s389_s20 = sshll.u32 (!%p882_p13), %s800_s18, 4 }
  0x4f   : > { %s179_s4 = scalar_lea.sflag (!%p882_p13), [#allocation3], %s800_s18  ;;  %s182_s6 = scalar_lea.vmem (!%p882_p13), [#allocation2], %s389_s20 }
  0x55   : > { %594 = dma.done.wait (%p883_p3), %s179_s4, 256  }
  0x56   : > { %596 = vsyncadd (%p883_p3), %s179_s4, 4294967040  ;;  %s390_s5 = sshll.u32 %s800_s18, 3  ;;  %s188_s15 = scalar_lea.sflag [#allocation6], %s800_s18 }
  0x57   : > { %s191_s19 = scalar_lea.vmem [#allocation5], %s390_s5 }
  0x58   : > { %598 = dma.done.wait (%p883_p3), %s188_s15, 128  }
  0x59   : > { %600 = vsyncadd (%p883_p3), %s188_s15, 4294967168  ;;  %s391_s26 = sshll.u32 %s800_s18, 5  ;;  %v225_v0 = vld [vmem:[%s182_s6] sm:$0xff]  ;;  %v392_v1 = vld [vmem:[%s182_s6 + $0x8] sm:$0xff]  ;;  %v633_v4 = vmov 0.0   ;;  %s406_s21 = sshll.u32 %s619_s12, 9 }
  0x5a   : > { %v233_v2 = vld [vmem:[%s191_s19] sm:$0xff]  ;;  %v228_v3 = vsub.f32 %v392_v1, %v225_v0  ;;  %s216_s30 = scalar_lea.vmem [#allocation7], %s391_s26  ;;  %s819_s3 = scalar_lea.hbm %s872_s2, %s406_s21 }
  0x5b   : > { %vm234_vm0 = vcmp.ne.f32.partialorder %v233_v2, 0.0  ;;  %s272_s27 = sshll.u32 %s216_s30, 4  ;;  %s259_s25 = scalar_lea.sflag [#allocation4], %s800_s18  ;;  %s821_s27 = int_to_ptr.vmem [resolvable:$true] %s272_s27 }
  0x5c   : > { %v393_v5 = vsel %vm234_vm0, 1.0, %v633_v4  ;;  %v229_v6 = vmul.f32 0.5, %v228_v3  ;;  %s541_s7 = scalar_lea.vmem %s821_s27, 512  ;;  %p884_p0 = scmp.ne.s32.totalorder %s877_s22, 0 }
  0x5d   : > { %399 = vst [vmem:[%s216_s30 + $0x18] sm:$0xff] %v393_v5  ;;  %p542_p8 = scmp.ne.s32.totalorder %s821_s27, %s541_s7  ;;  %s634_s12 = smov [#allocation7]  }
  0x5e   : > { %479 = vtanh.f32 %v229_v6  ;;  %s545_s8 = sshll.u32 %s634_s12, 4  ;;  %s546_s8 = int_to_ptr.vmem [resolvable:$false] %s545_s8 }
  0x5f   : > { %p543_p11 = pnand %p542_p8, %p884_p0  ;;  %s547_s16 = scalar_lea.vmem %s546_s8, 1024 }
  0x60   : > { %p548_p7 = scmp.lt.s32.totalorder %s821_s27, %s546_s8  ;;  %p549_p10 = scmp.lt.s32.totalorder %s547_s16, %s541_s7 }
  0x61   : > { %p544_p4 = pneg %p543_p11 }
  0x62   : > { %p550_p12 = por %p549_p10, %p548_p7 }
  0x64   : > { %p551_p9 = pnand %p550_p12, %p544_p4 }
  0x68   : > { %v480_v7 = vpop.eup %479 }
  0x69   : > { %v231_v8 = vmul.f32 0.5, %v480_v7 }
  0x6b   : > { %v232_v9 = vadd.f32 0.5, %v231_v8 }
  0x6d   : > { %v238_v10 = vmul.f32 %v393_v5, %v232_v9  ;;  %v249_v11 = vmul.f32 %v232_v9, %v232_v9  ;;  %395 = vst [vmem:[%s216_s30 + $0x8] sm:$0xff] %v232_v9 }
  0x6f   : > { %241 = vst [vmem:[%s216_s30] sm:$0xff] %v238_v10  ;;  %397 = vst [vmem:[%s216_s30 + $0x10] sm:$0xff] %v249_v11 }
  0x70   : > { %554 = shalt.err (!%p551_p9)
}
  0x71   : > { %s555_s20 = scalar_lea.hbm %s819_s3, 512  ;;  %s559_s5 = scalar_lea.hbm %s872_s2, 1024 }
  0x72   : > { %p556_p1 = scmp.ne.s32.totalorder %s819_s3, %s555_s20  ;;  %p560_p5 = scmp.lt.u32.totalorder %s819_s3, %s872_s2 }
  0x73   : > { %p561_p13 = scmp.lt.u32.totalorder %s559_s5, %s555_s20  ;;  %p563_p8 = scmp.lt.u32.totalorder %s555_s20, %s819_s3 }
  0x74   : > { %p557_p6 = pnand %p556_p1, %p884_p0 }
  0x75   : > { %p562_p3 = por %p561_p13, %p560_p5 }
  0x76   : > { %p558_p2 = pneg %p557_p6 }
  0x77   : > { %p564_p11 = por %p563_p8, %p562_p3 }
  0x79   : > { %p565_p4 = pnand %p564_p11, %p558_p2 }
  0x7b   : > { %568 = shalt.err (!%p565_p4)
}
  0x7c   : > { %s635_s26 = smov 128   ;;  %s636_s30 = smov 8  }
  0x7d   : > { %411 = dma.vmem_to_hbm [thread:$0]  (%p884_p0), %s821_s27, 512, %s819_s3, %s259_s25, %s635_s26, %s635_s26, %s636_s30  }
  0x7e PF: > { %s287_s21 = sand.u32 1, %s607_s9   ;;  %p885_p7 = scmp.ne.s32.totalorder %s878_s24, 0 }
  0x7f   : > { %p886_p10 = scmp.ge.s32.totalorder %s627_s14, 2  ;;  %s288_s28 = scalar_lea.sflag [#allocation4], %s287_s21 }
  0x81   : > { %p421_p12 = pnand %p886_p10, %p885_p7 }
  0x83   : > { %602 = dma.done.wait (!%p421_p12), %s288_s28, 512  }
  0x84   : > { %604 = vsyncadd (!%p421_p12), %s288_s28, 4294966784  ;;  %s21_s14 = sadd.s32 1, %s627_s14   ;;  %s887_s9 = smov %s611_s10 }
  0x85   : > { %p18_p9 = scmp.ge.s32.totalorder %s21_s14, 4   ;;  %s888_s10 = smov %s615_s11 }
  0x86   : > { %s889_s11 = smov %s708_s23  ;;  %s890_s12 = smov %s623_s13 }
  0x87   : > { %s891_s13 = smov %s893_s17  ;;  %20 = sbr.rel (!%p18_p9) target bundleno = 8 (0x8), region = 94 }
  0x8e   :  { %293 = vsyncpa [#allocation3], 1 }
  0x8f   :  { %295 = vsyncpa [#allocation3 + $0x1], 1 }
  0x90   :  { %296 = vsyncpa [#allocation6], 1 }
  0x91   :  { %298 = vsyncpa [#allocation6 + $0x1], 1 }
  0x92   :  { %299 = vsyncpa [#allocation4], 1 }
  0x93   :  { %301 = vsyncpa [#allocation4 + $0x1], 1 }

</bundles_post_ra>
